<compile_context>
chip_gen: v7x
topology: tpu7x:2x2x1
jax: 0.10.0
libtpu: 0.0.40
codegen_flags: <defaults>
</compile_context>

<pallas_src>
import functools

import numpy as np
import jax
import jax.numpy as jnp
from jax.experimental import pallas as pl
from jax.experimental.pallas import tpu as pltpu


def _round_up(n: int, m: int) -> int:
    return ((n + m - 1) // m) * m


# Minimum sublane multiple per itemsize (sub-32-bit dtypes pack along sublanes).
_MIN_SUBLANES = {1: 32, 2: 16, 4: 8, 8: 8}


def _pick_tile_n(n_rows: int, n_cls: int, itemsize: int, tile_n: int) -> int:
    """Pick a sublane-aligned batch tile under a ~12 MiB per-tile VMEM budget."""
    sub = _MIN_SUBLANES.get(itemsize, 8)
    if n_rows <= tile_n:
        return _round_up(n_rows, sub)
    # Per-row VMEM cost: double-buffered x tile + ~4 live f32 (tn, C) temps.
    per_row = 2 * n_cls * itemsize + 4 * n_cls * 4
    budget = 12 << 20
    tn = min(tile_n, max(sub, budget // per_row))
    tn = max(sub, (tn // sub) * sub)
    return tn


def la_loss_kernel(x_ref, iota_ref, tgt_ref, out_ref, *,
                   n_rows, tile_n, needs_mask):
    """One batch tile: logit adjust + log-softmax + target gather + per-row NLL."""
    i = pl.program_id(0)

    x = x_ref[...].astype(jnp.float32)              # (tn, C); f32 upcast in-vreg
    adj = x + iota_ref[...]                         # (1, C) prior block, resident

    # Numerically stable log-sum-exp along the class axis (f32 everywhere;
    # v5e has no bf16 EUP/VPU paths).
    m = jnp.max(adj, axis=-1, keepdims=True)        # (tn, 1)
    lse = jnp.log(jnp.sum(jnp.exp(adj - m), axis=-1, keepdims=True))

    # Target gather via one-hot compare against lane-dense targets. The
    # (1, tn) -> (tn, 1) transpose rides the otherwise-idle XLU slot.
    tgt_col = jnp.transpose(tgt_ref[...])           # (tn, 1) i32
    cls_ids = jax.lax.broadcasted_iota(jnp.int32, adj.shape, 1)
    tgt_logit = jnp.sum(jnp.where(cls_ids == tgt_col, adj, 0.0),
                        axis=-1, keepdims=True)     # gathered from adj, not z

    # logp[target] = (adj[target] - m) - lse  =>  nll = lse + m - adj[target]
    nll = lse + m - tgt_logit                       # (tn, 1)

    if needs_mask:  # static branch: only emitted when N % tn != 0
        row_ids = jax.lax.broadcasted_iota(jnp.int32, (tile_n, 1), 0) + i * tile_n
        nll = jnp.where(row_ids < n_rows, nll, 0.0)  # select blocks NaN/Inf

    out_ref[...] = jnp.transpose(nll)               # lane-dense (1, tn) write


def la_loss(x, target, iota_list, *, tile_n=1024):
    """Pallas equivalent of LAloss.forward(x, target) (mean cross-entropy)."""
    N, C = x.shape
    itemsize = int(jnp.dtype(x.dtype).itemsize)
    tn = _pick_tile_n(N, C, itemsize, tile_n)
    grid = (N + tn - 1) // tn
    n_pad = grid * tn

    iota2 = iota_list.astype(jnp.float32).reshape(1, C)

    # Lane-dense target layout: (grid, 1, tn) i32, padded with class 0 (padded
    # rows are masked to zero NLL in-kernel anyway).
    tgt = target.astype(jnp.int32)
    if n_pad != N:
        tgt = jnp.pad(tgt, (0, n_pad - N))
    tgt3 = tgt.reshape(grid, 1, tn)

    # Only pad the logits when a single tile is larger than the whole batch
    # (cheap); a ragged final tile among many is handled by the row mask.
    if N < tn:
        x = jnp.pad(x, ((0, tn - N), (0, 0)))

    kernel = functools.partial(la_loss_kernel, n_rows=N, tile_n=tn,
                               needs_mask=(n_pad != N))

    # Advisory cost: x stream + sublane-padded (8x) target/output tiles.
    bytes_accessed = N * C * itemsize + 2 * grid * 8 * tn * 4 + C * 4
    vmem_need = tn * (2 * C * itemsize + 4 * C * 4) + 4 * 8 * tn * 4 + 2 * C * 4
    vmem_limit = int(min(64 << 20, max(32 << 20, 2 * vmem_need)))

    out = pl.pallas_call(
        kernel,
        out_shape=jax.ShapeDtypeStruct((grid, 1, tn), jnp.float32),
        grid_spec=pltpu.PrefetchScalarGridSpec(
            num_scalar_prefetch=0,
            grid=(grid,),
            in_specs=[
                pl.BlockSpec((tn, C), lambda i: (i, 0)),            # logits tile
                pl.BlockSpec((1, C), lambda i: (0, 0)),             # class priors
                pl.BlockSpec((None, 1, tn), lambda i: (i, 0, 0)),   # targets
            ],
            out_specs=pl.BlockSpec((None, 1, tn), lambda i: (i, 0, 0)),
        ),
        # Each step writes its own output block, so the batch axis is a true
        # "parallel" axis (v7x megacore can split it across both TCs).
        compiler_params=pltpu.CompilerParams(
            dimension_semantics=("parallel",),
            vmem_limit_bytes=vmem_limit),
        cost_estimate=pl.CostEstimate(
            flops=6 * N * C,
            transcendentals=N * C,
            bytes_accessed=int(bytes_accessed)),
    )(x, iota2, tgt3)

    # Single mean over the true N (padded rows contributed exactly 0).
    return jnp.sum(out) / jnp.float32(N)


def la_loss_reference(x, target, iota_list):
    """Pure-JAX reference mirroring the PyTorch module."""
    adj = x.astype(jnp.float32) + iota_list.astype(jnp.float32)
    logp = jax.nn.log_softmax(adj, axis=-1)
    nll = -jnp.take_along_axis(logp, target[:, None].astype(jnp.int32), axis=-1)
    return jnp.mean(nll)


if __name__ == "__main__":
    key = jax.random.PRNGKey(0)

    N = 8    # batch
    C = 16   # number of classes

    # Deterministic class-count list (module __init__ argument), then
    # iota_list = tau * log(cls_probs), exactly as in the PyTorch __init__.
    tau = 1.0
    cls_num_list = np.arange(1, C + 1, dtype=np.float64) * 10.0
    cls_probs = cls_num_list / cls_num_list.sum()
    iota_list = jnp.asarray(tau * np.log(cls_probs), dtype=jnp.float32)

    kx, kt = jax.random.split(key)
    x = jax.random.normal(kx, (N, C), dtype=jnp.float32)
    target = jax.random.randint(kt, (N,), 0, C, dtype=jnp.int32)

    # f32 path
    loss = la_loss(x, target, iota_list)
    jax.block_until_ready(loss)
    ref = la_loss_reference(x, target, iota_list)
    assert jnp.allclose(loss, ref, atol=1e-5, rtol=1e-5), (loss, ref)

    # bf16 passthrough path (input DMAed as bf16, compute stays f32 in-kernel)
    loss_bf16 = la_loss(x.astype(jnp.bfloat16), target, iota_list)
    jax.block_until_ready(loss_bf16)
    assert jnp.allclose(loss_bf16, ref, atol=5e-2, rtol=5e-2), (loss_bf16, ref)

    print("KERNEL_OK")
</pallas_src>

<mosaic_0001>
module attributes {stable_mosaic.version = 11 : i64} {
  func.func @la_loss_kernel(%arg0: i32, %arg1: memref<8x16xf32, #tpu.memory_space<vmem>>, %arg2: memref<1x16xf32, #tpu.memory_space<vmem>>, %arg3: memref<1x1x8xi32, #tpu.memory_space<vmem>>, %arg4: memref<1x1x8xf32, #tpu.memory_space<vmem>>) attributes {dimension_semantics = [#tpu.dimension_semantics<parallel>], iteration_bounds = array<i64: 1>, scalar_prefetch = 0 : i64, scratch_operands = 0 : i64, tpu.core_type = #tpu.core_type<tc>, window_params = [{transform_indices = @transform_0, window_bounds = array<i64: 8, 16>}, {pipeline_mode = #tpu.pipeline_mode<synchronous>, transform_indices = @transform_1, window_bounds = array<i64: 1, 16>}, {transform_indices = @transform_2, window_bounds = array<i64: 1, 1, 8>}, {transform_indices = @transform_3, window_bounds = array<i64: 1, 1, 8>}]} {
    %c0 = arith.constant 0 : index
    %c0_0 = arith.constant 0 : index
    %0 = vector.load %arg1[%c0, %c0_0] : memref<8x16xf32, #tpu.memory_space<vmem>>, vector<8x16xf32>
    %c0_1 = arith.constant 0 : index
    %c0_2 = arith.constant 0 : index
    %1 = vector.load %arg2[%c0_1, %c0_2] : memref<1x16xf32, #tpu.memory_space<vmem>>, vector<1x16xf32>
    %2 = vector.broadcast %1 : vector<1x16xf32> to vector<8x16xf32>
    %3 = arith.addf %0, %2 : vector<8x16xf32>
    %cst = arith.constant dense<0xFF800000> : vector<8xf32>
    %4 = vector.multi_reduction <maximumf>, %3, %cst [1] : vector<8x16xf32> to vector<8xf32>
    %5 = vector.shape_cast %4 : vector<8xf32> to vector<8x1xf32>
    %6 = vector.broadcast %5 : vector<8x1xf32> to vector<8x16xf32>
    %7 = arith.subf %3, %6 : vector<8x16xf32>
    %8 = math.exp %7 : vector<8x16xf32>
    %cst_3 = arith.constant dense<0.000000e+00> : vector<8xf32>
    %9 = vector.multi_reduction <add>, %8, %cst_3 [1] : vector<8x16xf32> to vector<8xf32>
    %10 = vector.shape_cast %9 : vector<8xf32> to vector<8x1xf32>
    %11 = math.log %10 : vector<8x1xf32>
    %c0_4 = arith.constant 0 : index
    %c0_5 = arith.constant 0 : index
    %c0_6 = arith.constant 0 : index
    %12 = vector.load %arg3[%c0_4, %c0_5, %c0_6] : memref<1x1x8xi32, #tpu.memory_space<vmem>>, vector<1x1x8xi32>
    %13 = vector.shape_cast %12 : vector<1x1x8xi32> to vector<1x8xi32>
    %14 = tpu.transpose %13, [1, 0] : vector<1x8xi32> -> vector<8x1xi32>
    %15 = tpu.iota {dimensions = array<i32: 1>} : vector<8x16xi32>
    %16 = vector.broadcast %14 : vector<8x1xi32> to vector<8x16xi32>
    %17 = arith.cmpi eq, %15, %16 : vector<8x16xi32>
    %cst_7 = arith.constant 0.000000e+00 : f32
    %18 = vector.broadcast %cst_7 : f32 to vector<8x16xf32>
    %19 = arith.select %17, %3, %18 : vector<8x16xi1>, vector<8x16xf32>
    %cst_8 = arith.constant dense<0.000000e+00> : vector<8xf32>
    %20 = vector.multi_reduction <add>, %19, %cst_8 [1] : vector<8x16xf32> to vector<8xf32>
    %21 = vector.shape_cast %20 : vector<8xf32> to vector<8x1xf32>
    %22 = arith.addf %11, %5 : vector<8x1xf32>
    %23 = arith.subf %22, %21 : vector<8x1xf32>
    %24 = tpu.transpose %23, [1, 0] : vector<8x1xf32> -> vector<1x8xf32>
    %c0_9 = arith.constant 0 : index
    %c0_10 = arith.constant 0 : index
    %c0_11 = arith.constant 0 : index
    %25 = vector.load %arg4[%c0_9, %c0_10, %c0_11] : memref<1x1x8xf32, #tpu.memory_space<vmem>>, vector<1x1x8xf32>
    %26 = vector.shape_cast %25 : vector<1x1x8xf32> to vector<1x8xf32>
    %27 = vector.shape_cast %24 : vector<1x8xf32> to vector<1x1x8xf32>
    tpu.vector_store %arg4[%c0_9, %c0_10, %c0_11], %27 {strides = array<i32>} : memref<1x1x8xf32, #tpu.memory_space<vmem>>, vector<1x1x8xf32>,
    return
  }
  func.func @transform_0(%arg0: i32) -> (i32, i32) {
    %c0_i32 = arith.constant 0 : i32
    %c0_i32_0 = arith.constant 0 : i32
    return %arg0, %c0_i32 : i32, i32
  }
  func.func @transform_1(%arg0: i32) -> (i32, i32) {
    %c0_i32 = arith.constant 0 : i32
    %c0_i32_0 = arith.constant 0 : i32
    %c0_i32_1 = arith.constant 0 : i32
    return %c0_i32, %c0_i32_0 : i32, i32
  }
  func.func @transform_2(%arg0: i32) -> (i32, i32, i32) {
    %c0_i32 = arith.constant 0 : i32
    %c0_i32_0 = arith.constant 0 : i32
    %c0_i32_1 = arith.constant 0 : i32
    return %arg0, %c0_i32, %c0_i32_0 : i32, i32, i32
  }
  func.func @transform_3(%arg0: i32) -> (i32, i32, i32) {
    %c0_i32 = arith.constant 0 : i32
    %c0_i32_0 = arith.constant 0 : i32
    %c0_i32_1 = arith.constant 0 : i32
    return %arg0, %c0_i32, %c0_i32_0 : i32, i32, i32
  }
}

</mosaic_0001>

<bundles_post_ra>
// kernel: tpu_custom_call.1
= control target key start
LH: loop header
LB: loop body
LE: loop exit
PB: predicated region body
PF: predicated region fallthrough
CT: control target
= control target key end

     0   :  { %8 = vsyncpa [#allocation3], 0  ;;  %s257_s0 = inlined_call_operand.hbm [shape: f32[8,16], index: 0, kind: input, shape index: {}]   ;;  %s258_s1 = inlined_call_operand.vmem [shape: f32[1,16], index: 1, kind: input, shape index: {}]   ;;  %s259_s2 = inlined_call_operand.vmem [shape: s32[1,1,8], index: 2, kind: input, shape index: {}]   ;;  %s260_s3 = inlined_call_operand.hbm [shape: f32[1,1,8], index: 3, kind: output, shape index: {}]  }
   0x1   :  { %9 = vsyncpa [#allocation4], 0  ;;  %s201_s12 = smov [#allocation2]   ;;  %s153_s16 = scalar_lea.hbm %s257_s0, 128 }
   0x2   :  { %s16_s13 = sshll.u32 %s201_s12, 4  ;;  %p154_p0 = scmp.ne.s32.totalorder %s257_s0, %s153_s16  ;;  %s17_s13 = int_to_ptr.vmem [resolvable:$true] %s16_s13 }
   0x3   :  { %p157_p1 = scmp.lt.u32.totalorder %s153_s16, %s257_s0 }
   0x5   :  { %p159_p2 = pnand %p157_p1, %p154_p0 }
   0x7   :  { %162 = shalt.err (!%p159_p2)
}
   0x8   :  { %s163_s21 = scalar_lea.vmem %s17_s13, 128  ;;  %p168_p4 = scmp.lt.s32.totalorder %s17_s13, %s17_s13 }
   0x9   :  { %p164_p3 = scmp.ne.s32.totalorder %s17_s13, %s163_s21  ;;  %p169_p5 = scmp.lt.s32.totalorder %s163_s21, %s163_s21 }
   0xb   :  { %p170_p6 = por %p169_p5, %p168_p4 }
   0xd   :  { %p171_p7 = pnand %p170_p6, %p164_p3 }
   0xf   :  { %174 = shalt.err (!%p171_p7)
}
  0x10   :  { %19 = dma.hbm_to_vmem [thread:$0]  %s257_s0, 128, %s17_s13, [#allocation3]  }
  0x11   :  { %197 = dma.done.wait [#allocation3], 128  }
  0x12   :  { %198 = vsyncadd [#allocation3], 4294967168  ;;  %v27_v0 = vld [vmem:[#allocation2] sm:$0xff]  ;;  %vm36_vm0 = vcmask 130048   ;;  %v202_v4 = vmov 0   ;;  %v81_v12 = vlaneseq  ;;  %s203_s0 = smov [#allocation5]  }
  0x13   :  { %v142_v1 = vld [vmem:[%s258_s1] ss:$0 sm:$0xff]  ;;  %147 = vset.pattern.permute.xlu1 %v202_v4  ;;  %s133_s1 = sshll.u32 %s203_s0, 4  ;;  %vm125_vm2 = vcmask 57344   ;;  %s134_s1 = int_to_ptr.vmem [resolvable:$true] %s133_s1 }
  0x14   :  { %v35_v2 = vadd.f32 %v142_v1, %v27_v0  ;;  %v48_v5 = vld [vmem:[%s259_s2] sm:$0x1]  ;;  %v82_v13 = vand.u32 127, %v81_v12  ;;  %s175_s2 = scalar_lea.vmem %s134_s1, 16  ;;  %s179_s28 = scalar_lea.vmem %s134_s1, 32 }
  0x15   :  { %p176_p8 = scmp.ne.s32.totalorder %s134_s1, %s175_s2  ;;  %p180_p9 = scmp.lt.s32.totalorder %s134_s1, %s134_s1 }
  0x16   :  { %v37_v3 = vsel %vm36_vm0, %v35_v2, -inf  ;;  %p181_p10 = scmp.lt.s32.totalorder %s179_s28, %s175_s2 }
  0x17   :  { %38 = vmax.xlane.f32.xlu0 %v37_v3 }
  0x18   :  { %p182_p11 = por %p181_p10, %p180_p9 }
  0x1a   :  { %p183_p12 = pnand %p182_p11, %p176_p8 }
  0x44   :  { %49 = vxpose.xlu0.b32.start.end [1/1] (short) (narrow) %v48_v5, 8 }
  0x6d   :  { %148 = vset.pattern.permute.xlu0 %v202_v4 }
  0xa4   :  { %v39_v6 = vpop.xlane.xlu0 %38 }
  0xa5   :  { %v40_v8 = vsub.f32 %v35_v2, %v39_v6 }
  0xa7   :  { %v41_v9 = vmul.f32 1.442695, %v40_v8 }
  0xa9   :  { %149 = vpow2.f32 %v41_v9 }
  0xb3   :  { %v150_v10 = vpop.eup %149 }
  0xb4   :  { %v43_v11 = vsel %vm36_vm0, %v150_v10, 0.0 }
  0xc4   :  { %v65_v7 = vpop.trf.xlu0 }
  0xc5   :  { %84 = vperm.xlu1 %147, %v65_v7  }
  0xe9   :  { %44 = vadd.xlane.f32.xlu1 %v43_v11 }
 0x144   :  { %v85_v14 = vpop.permute.xlu1 %84 }
 0x145   :  { %vm86_vm1 = vcmp.eq.s32.totalorder %v82_v13, %v85_v14 }
 0x146   :  { %v87_v15 = vsel %vm86_vm1, %v35_v2, 0.0 }
 0x147   :  { %v88_v16 = vsel %vm36_vm0, %v87_v15, 0.0 }
 0x148   :  { %89 = vadd.xlane.f32.xlu1 %v88_v16 }
 0x176   :  { %v45_v17 = vpop.xlane.xlu1 %44 }
 0x177   :  { %151 = vlog2.f32 %v45_v17 }
 0x181   :  { %v152_v18 = vpop.eup %151 }
 0x182   :  { %v47_v19 = vmul.f32 0.6931472, %v152_v18 }
 0x184   :  { %v91_v20 = vadd.f32 %v47_v19, %v39_v6 }
 0x1d5   :  { %v90_v21 = vpop.xlane.xlu1 %89 }
 0x1d6   :  { %v92_v22 = vsub.f32 %v91_v20, %v90_v21 }
 0x1d8   :  { %93 = vxpose.xlu1.b32.start.end [1/1] (short) (narrow) %v92_v22, 8 }
 0x258   :  { %v109_v23 = vpop.trf.xlu1 }
 0x259   :  { %126 = vst.msk [vmem:[#allocation5] sm:$0x1] %vm125_vm2, %v109_v23 }
 0x25a   :  { %186 = shalt.err (!%p183_p12)
}
 0x25b   :  { %s187_s4 = scalar_lea.hbm %s260_s3, 16 }
 0x25c   :  { %p188_p13 = scmp.ne.s32.totalorder %s260_s3, %s187_s4  ;;  %p191_p0 = scmp.lt.u32.totalorder %s187_s4, %s260_s3 }
 0x25e   :  { %p193_p1 = pnand %p191_p0, %p188_p13 }
 0x260   :  { %196 = shalt.err (!%p193_p1)
}
 0x261   :  { %136 = dma.vmem_to_hbm [thread:$0]  %s134_s1, 16, %s260_s3, [#allocation4]  }
 0x262   :  { %199 = dma.done.wait [#allocation4], 16  }
 0x263   :  { %200 = vsyncadd [#allocation4], 4294967280 }
 0x264   :  { %140 = vsyncpa [#allocation3], 1 }
 0x265   :  { %141 = vsyncpa [#allocation4], 1 }

</bundles_post_ra>
